<compile_context>
chip_gen: v7x
topology: tpu7x:2x2x1
jax: 0.10.0
libtpu: 0.0.40
codegen_flags: <defaults>
</compile_context>

<pallas_src>
import jax
import jax.numpy as jnp
from jax import lax
from jax.experimental import pallas as pl
from jax.experimental.pallas import tpu as pltpu  # noqa: F401  (TPU backend)

GENERATORCONFIGS = {
    'mnist': (512, 28), 'fmnist': (512, 28), 'emnist': (512, 28),
    'rmnist': (512, 28), 'cifar': (512, 32), 'pacs': (512, 224),
}

_BN_EPS = 1e-5
_SOFTPLUS_THRESHOLD = 20.0


def _softplus(x):
    """torch.nn.functional.softplus (beta=1, threshold=20), written with plain log/exp
    so it lowers cleanly to the EUP (no log1p primitive required)."""
    safe = jnp.minimum(x, _SOFTPLUS_THRESHOLD)
    return jnp.where(x > _SOFTPLUS_THRESHOLD, x, jnp.log(1.0 + jnp.exp(safe)))


def _prob_generator_kernel(labels_ref, w1t_ref, b1_ref, gamma_ref, beta_ref,
                           w2mu_t_ref, b2mu_ref, w2sg_t_ref, b2sg_ref, eps_ref,
                           z_ref, mu_ref, sigma_ref):
    batch = labels_ref.shape[0]
    n_class = w1t_ref.shape[0]

    # one-hot(labels): y_input.zero_(); y_input.scatter_(1, labels.view(-1,1), 1)
    col = lax.broadcasted_iota(jnp.int32, (batch, n_class), 1)        # (B, C)
    y = (col == labels_ref[...]).astype(jnp.float32)                   # (B, C)

    # fc: y @ W1^T + b1  (W1 pre-transposed in wrapper -> standard MXU contraction)
    h = jnp.dot(y, w1t_ref[...], preferred_element_type=jnp.float32)    # (B, H)
    h = h + b1_ref[...]

    # BatchNorm1d, training-mode batch statistics (biased variance, as torch)
    mean = jnp.mean(h, axis=0, keepdims=True)
    cent = h - mean
    var = jnp.mean(cent * cent, axis=0, keepdims=True)
    h = gamma_ref[...] * (cent * lax.rsqrt(var + _BN_EPS)) + beta_ref[...]

    # ReLU
    a = jnp.maximum(h, 0.0)

    # representation layer, pre-split into mu / pre-sigma halves (lane-dense outputs;
    # no mid-tile lane slicing inside the kernel)
    z_mu = jnp.dot(a, w2mu_t_ref[...], preferred_element_type=jnp.float32) + b2mu_ref[...]
    z_pre = jnp.dot(a, w2sg_t_ref[...], preferred_element_type=jnp.float32) + b2sg_ref[...]
    z_sigma = _softplus(z_pre)

    # reparameterized sample: Normal(mu, sigma).rsample() = mu + sigma * eps
    z_ref[...] = z_mu + z_sigma * eps_ref[...]
    mu_ref[...] = z_mu
    sigma_ref[...] = z_sigma


def prob_generator_forward(labels, params, eps):
    """JAX wrapper equivalent to ProbGenerator.forward(labels) (training-mode BN)."""
    batch = labels.shape[0]
    z_dim = eps.shape[1]

    w1 = params["w1"].astype(jnp.float32)                    # (H, C)
    hidden_dim, n_class = w1.shape
    w1t = w1.T                                               # (C, H)
    b1 = params["b1"].astype(jnp.float32).reshape(1, hidden_dim)
    gamma = params["gamma"].astype(jnp.float32).reshape(1, hidden_dim)
    beta = params["beta"].astype(jnp.float32).reshape(1, hidden_dim)
    w2 = params["w2"].astype(jnp.float32)                    # (2*z_dim, H)
    b2 = params["b2"].astype(jnp.float32)                    # (2*z_dim,)

    # split + transpose representation layer so the kernel does standard matmuls
    # and never slices lanes mid-tile
    w2mu_t = w2[:z_dim].T                                    # (H, z_dim)
    w2sg_t = w2[z_dim:].T                                    # (H, z_dim)
    b2mu = b2[:z_dim].reshape(1, z_dim)
    b2sg = b2[z_dim:].reshape(1, z_dim)

    labels2d = labels.reshape(batch, 1).astype(jnp.int32)
    eps = eps.astype(jnp.float32)

    inputs = (labels2d, w1t, b1, gamma, beta, w2mu_t, b2mu, w2sg_t, b2sg, eps)

    in_bytes = sum(int(x.size) * jnp.dtype(x.dtype).itemsize for x in inputs)
    out_bytes = 3 * batch * z_dim * 4
    cost = pl.CostEstimate(
        flops=2 * batch * n_class * hidden_dim + 4 * batch * hidden_dim * z_dim,
        transcendentals=2 * batch * z_dim + hidden_dim,
        bytes_accessed=in_bytes + out_bytes,
    )

    z, z_mu, z_sigma = pl.pallas_call(
        _prob_generator_kernel,
        out_shape=(
            jax.ShapeDtypeStruct((batch, z_dim), jnp.float32),  # z
            jax.ShapeDtypeStruct((batch, z_dim), jnp.float32),  # z_mu
            jax.ShapeDtypeStruct((batch, z_dim), jnp.float32),  # z_sigma
        ),
        cost_estimate=cost,
        # no grid: all operands are tiny whole-array VMEM blocks
    )(*inputs)
    return z, (z_mu, z_sigma)


def prob_generator_ref(labels, params, eps):
    """Pure-JAX reference mirroring the PyTorch forward, for verification."""
    z_dim = eps.shape[1]
    n_class = params["w1"].shape[1]
    y = jax.nn.one_hot(labels, n_class, dtype=jnp.float32)
    h = jnp.dot(y, params["w1"].T) + params["b1"]
    mean = jnp.mean(h, axis=0, keepdims=True)
    var = jnp.mean((h - mean) ** 2, axis=0, keepdims=True)
    h = (h - mean) / jnp.sqrt(var + _BN_EPS)
    h = params["gamma"] * h + params["beta"]
    a = jnp.maximum(h, 0.0)
    z_rep = jnp.dot(a, params["w2"].T) + params["b2"]
    z_mu = z_rep[:, :z_dim]
    z_sigma = _softplus(z_rep[:, z_dim:])
    z = z_mu + z_sigma * eps
    return z, (z_mu, z_sigma)


if __name__ == "__main__":
    num_classes = 10
    z_dim = 32
    dataset = "cifar"
    hidden_dim, _ = GENERATORCONFIGS[dataset]
    latent_dim = 2 * z_dim
    batch = 8

    key = jax.random.PRNGKey(0)
    k_lbl, k_w1, k_b1, k_g, k_bta, k_w2, k_b2, k_eps = jax.random.split(key, 8)

    labels = jax.random.randint(k_lbl, (batch,), 0, num_classes, dtype=jnp.int32)

    bound1 = float(num_classes) ** -0.5
    bound2 = float(hidden_dim) ** -0.5
    params = {
        "w1": jax.random.uniform(k_w1, (hidden_dim, num_classes), jnp.float32, -bound1, bound1),
        "b1": jax.random.uniform(k_b1, (hidden_dim,), jnp.float32, -bound1, bound1),
        "gamma": 1.0 + 0.1 * jax.random.normal(k_g, (hidden_dim,), jnp.float32),
        "beta": 0.1 * jax.random.normal(k_bta, (hidden_dim,), jnp.float32),
        "w2": jax.random.uniform(k_w2, (latent_dim, hidden_dim), jnp.float32, -bound2, bound2),
        "b2": jax.random.uniform(k_b2, (latent_dim,), jnp.float32, -bound2, bound2),
    }
    eps = jax.random.normal(k_eps, (batch, z_dim), jnp.float32)

    z, (z_mu, z_sigma) = prob_generator_forward(labels, params, eps)
    z = jax.block_until_ready(z)

    z_r, (mu_r, sig_r) = prob_generator_ref(labels, params, eps)
    z_r = jax.block_until_ready(z_r)

    # Tolerance covers MXU f32 pass-count differences between the Pallas matmuls and the
    # XLA reference matmuls; structural bugs would land far outside it.
    ok = (bool(jnp.allclose(z, z_r, rtol=1e-2, atol=1e-3)) and
          bool(jnp.allclose(z_mu, mu_r, rtol=1e-2, atol=1e-3)) and
          bool(jnp.allclose(z_sigma, sig_r, rtol=1e-2, atol=1e-3)))

    if ok:
        print("KERNEL_OK")
    else:
        print("MISMATCH:",
              "max|z|err=", float(jnp.max(jnp.abs(z - z_r))),
              "max|mu|err=", float(jnp.max(jnp.abs(z_mu - mu_r))),
              "max|sigma|err=", float(jnp.max(jnp.abs(z_sigma - sig_r))))
</pallas_src>

<mosaic_0001>
module attributes {stable_mosaic.version = 11 : i64} {
  func.func @_prob_generator_kernel(%arg0: memref<8x1xi32, #tpu.memory_space<vmem>>, %arg1: memref<10x512xf32, #tpu.memory_space<vmem>>, %arg2: memref<1x512xf32, #tpu.memory_space<vmem>>, %arg3: memref<1x512xf32, #tpu.memory_space<vmem>>, %arg4: memref<1x512xf32, #tpu.memory_space<vmem>>, %arg5: memref<512x32xf32, #tpu.memory_space<vmem>>, %arg6: memref<1x32xf32, #tpu.memory_space<vmem>>, %arg7: memref<512x32xf32, #tpu.memory_space<vmem>>, %arg8: memref<1x32xf32, #tpu.memory_space<vmem>>, %arg9: memref<8x32xf32, #tpu.memory_space<vmem>>, %arg10: memref<8x32xf32, #tpu.memory_space<vmem>>, %arg11: memref<8x32xf32, #tpu.memory_space<vmem>>, %arg12: memref<8x32xf32, #tpu.memory_space<vmem>>) attributes {dimension_semantics = [], scalar_prefetch = 0 : i64, scratch_operands = 0 : i64, tpu.core_type = #tpu.core_type<tc>} {
    %0 = tpu.iota {dimensions = array<i32: 1>} : vector<8x10xi32>
    %c0 = arith.constant 0 : index
    %c0_0 = arith.constant 0 : index
    %1 = vector.load %arg0[%c0, %c0_0] : memref<8x1xi32, #tpu.memory_space<vmem>>, vector<8x1xi32>
    %2 = vector.broadcast %1 : vector<8x1xi32> to vector<8x10xi32>
    %3 = arith.cmpi eq, %0, %2 : vector<8x10xi32>
    %4 = arith.extui %3 : vector<8x10xi1> to vector<8x10xi32>
    %5 = arith.sitofp %4 : vector<8x10xi32> to vector<8x10xf32>
    %c0_1 = arith.constant 0 : index
    %c0_2 = arith.constant 0 : index
    %6 = vector.load %arg1[%c0_1, %c0_2] : memref<10x512xf32, #tpu.memory_space<vmem>>, vector<10x512xf32>
    %cst = arith.constant dense<0.000000e+00> : vector<8x512xf32>
    %7 = tpu.matmul %5, %6, %cst {dimension_numbers = #tpu.dot_dimension_numbers<[1], [0], [0], [1], [0, 0, 1, 1], [], []>} : vector<8x10xf32>, vector<10x512xf32>, vector<8x512xf32> -> vector<8x512xf32>
    %c0_3 = arith.constant 0 : index
    %c0_4 = arith.constant 0 : index
    %8 = vector.load %arg2[%c0_3, %c0_4] : memref<1x512xf32, #tpu.memory_space<vmem>>, vector<1x512xf32>
    %9 = vector.broadcast %8 : vector<1x512xf32> to vector<8x512xf32>
    %10 = arith.addf %7, %9 : vector<8x512xf32>
    %cst_5 = arith.constant dense<0.000000e+00> : vector<512xf32>
    %11 = vector.multi_reduction <add>, %10, %cst_5 [0] : vector<8x512xf32> to vector<512xf32>
    %12 = vector.shape_cast %11 : vector<512xf32> to vector<1x512xf32>
    %cst_6 = arith.constant 8.000000e+00 : f32
    %13 = vector.broadcast %cst_6 : f32 to vector<1x512xf32>
    %14 = arith.divf %12, %13 : vector<1x512xf32>
    %15 = vector.broadcast %14 : vector<1x512xf32> to vector<8x512xf32>
    %16 = arith.subf %10, %15 : vector<8x512xf32>
    %17 = arith.mulf %16, %16 : vector<8x512xf32>
    %cst_7 = arith.constant dense<0.000000e+00> : vector<512xf32>
    %18 = vector.multi_reduction <add>, %17, %cst_7 [0] : vector<8x512xf32> to vector<512xf32>
    %19 = vector.shape_cast %18 : vector<512xf32> to vector<1x512xf32>
    %cst_8 = arith.constant 8.000000e+00 : f32
    %20 = vector.broadcast %cst_8 : f32 to vector<1x512xf32>
    %21 = arith.divf %19, %20 : vector<1x512xf32>
    %c0_9 = arith.constant 0 : index
    %c0_10 = arith.constant 0 : index
    %22 = vector.load %arg3[%c0_9, %c0_10] : memref<1x512xf32, #tpu.memory_space<vmem>>, vector<1x512xf32>
    %cst_11 = arith.constant 9.99999974E-6 : f32
    %23 = vector.broadcast %cst_11 : f32 to vector<1x512xf32>
    %24 = arith.addf %21, %23 : vector<1x512xf32>
    %25 = math.rsqrt %24 : vector<1x512xf32>
    %26 = vector.broadcast %25 : vector<1x512xf32> to vector<8x512xf32>
    %27 = arith.mulf %16, %26 : vector<8x512xf32>
    %28 = vector.broadcast %22 : vector<1x512xf32> to vector<8x512xf32>
    %29 = arith.mulf %28, %27 : vector<8x512xf32>
    %c0_12 = arith.constant 0 : index
    %c0_13 = arith.constant 0 : index
    %30 = vector.load %arg4[%c0_12, %c0_13] : memref<1x512xf32, #tpu.memory_space<vmem>>, vector<1x512xf32>
    %31 = vector.broadcast %30 : vector<1x512xf32> to vector<8x512xf32>
    %32 = arith.addf %29, %31 : vector<8x512xf32>
    %cst_14 = arith.constant 0.000000e+00 : f32
    %33 = vector.broadcast %cst_14 : f32 to vector<8x512xf32>
    %34 = arith.maximumf %32, %33 : vector<8x512xf32>
    %c0_15 = arith.constant 0 : index
    %c0_16 = arith.constant 0 : index
    %35 = vector.load %arg5[%c0_15, %c0_16] : memref<512x32xf32, #tpu.memory_space<vmem>>, vector<512x32xf32>
    %cst_17 = arith.constant dense<0.000000e+00> : vector<8x32xf32>
    %36 = tpu.matmul %34, %35, %cst_17 {dimension_numbers = #tpu.dot_dimension_numbers<[1], [0], [0], [1], [0, 0, 1, 1], [], []>} : vector<8x512xf32>, vector<512x32xf32>, vector<8x32xf32> -> vector<8x32xf32>
    %c0_18 = arith.constant 0 : index
    %c0_19 = arith.constant 0 : index
    %37 = vector.load %arg6[%c0_18, %c0_19] : memref<1x32xf32, #tpu.memory_space<vmem>>, vector<1x32xf32>
    %38 = vector.broadcast %37 : vector<1x32xf32> to vector<8x32xf32>
    %39 = arith.addf %36, %38 : vector<8x32xf32>
    %c0_20 = arith.constant 0 : index
    %c0_21 = arith.constant 0 : index
    %40 = vector.load %arg7[%c0_20, %c0_21] : memref<512x32xf32, #tpu.memory_space<vmem>>, vector<512x32xf32>
    %cst_22 = arith.constant dense<0.000000e+00> : vector<8x32xf32>
    %41 = tpu.matmul %34, %40, %cst_22 {dimension_numbers = #tpu.dot_dimension_numbers<[1], [0], [0], [1], [0, 0, 1, 1], [], []>} : vector<8x512xf32>, vector<512x32xf32>, vector<8x32xf32> -> vector<8x32xf32>
    %c0_23 = arith.constant 0 : index
    %c0_24 = arith.constant 0 : index
    %42 = vector.load %arg8[%c0_23, %c0_24] : memref<1x32xf32, #tpu.memory_space<vmem>>, vector<1x32xf32>
    %43 = vector.broadcast %42 : vector<1x32xf32> to vector<8x32xf32>
    %44 = arith.addf %41, %43 : vector<8x32xf32>
    %cst_25 = arith.constant 2.000000e+01 : f32
    %45 = vector.broadcast %cst_25 : f32 to vector<8x32xf32>
    %46 = arith.minimumf %44, %45 : vector<8x32xf32>
    %cst_26 = arith.constant 2.000000e+01 : f32
    %47 = vector.broadcast %cst_26 : f32 to vector<8x32xf32>
    %48 = arith.cmpf ogt, %44, %47 : vector<8x32xf32>
    %49 = math.exp %46 : vector<8x32xf32>
    %cst_27 = arith.constant 1.000000e+00 : f32
    %50 = vector.broadcast %cst_27 : f32 to vector<8x32xf32>
    %51 = arith.addf %50, %49 : vector<8x32xf32>
    %52 = math.log %51 : vector<8x32xf32>
    %53 = arith.select %48, %44, %52 : vector<8x32xi1>, vector<8x32xf32>
    %c0_28 = arith.constant 0 : index
    %c0_29 = arith.constant 0 : index
    %54 = vector.load %arg9[%c0_28, %c0_29] : memref<8x32xf32, #tpu.memory_space<vmem>>, vector<8x32xf32>
    %55 = arith.mulf %53, %54 : vector<8x32xf32>
    %56 = arith.addf %39, %55 : vector<8x32xf32>
    %c0_30 = arith.constant 0 : index
    %c0_31 = arith.constant 0 : index
    %57 = vector.load %arg10[%c0_30, %c0_31] : memref<8x32xf32, #tpu.memory_space<vmem>>, vector<8x32xf32>
    tpu.vector_store %arg10[%c0_30, %c0_31], %56 {strides = array<i32>} : memref<8x32xf32, #tpu.memory_space<vmem>>, vector<8x32xf32>,
    %c0_32 = arith.constant 0 : index
    %c0_33 = arith.constant 0 : index
    %58 = vector.load %arg11[%c0_32, %c0_33] : memref<8x32xf32, #tpu.memory_space<vmem>>, vector<8x32xf32>
    tpu.vector_store %arg11[%c0_32, %c0_33], %39 {strides = array<i32>} : memref<8x32xf32, #tpu.memory_space<vmem>>, vector<8x32xf32>,
    %c0_34 = arith.constant 0 : index
    %c0_35 = arith.constant 0 : index
    %59 = vector.load %arg12[%c0_34, %c0_35] : memref<8x32xf32, #tpu.memory_space<vmem>>, vector<8x32xf32>
    tpu.vector_store %arg12[%c0_34, %c0_35], %53 {strides = array<i32>} : memref<8x32xf32, #tpu.memory_space<vmem>>, vector<8x32xf32>,
    return
  }
}

</mosaic_0001>

<bundles_post_ra>
// kernel: tpu_custom_call.1
= control target key start
LH: loop header
LB: loop body
LE: loop exit
PB: predicated region body
PF: predicated region fallthrough
CT: control target
= control target key end

     0   :  { %18 = vsyncpa [#allocation3], 0  ;;  %vm83_vm0 = vcmask 1041408   ;;  %v1227_v3 = vmov 0   ;;  %vm1228_vm1 = vmmov 1   ;;  %v1229_v11 = vmov 0.0   ;;  %s1802_s0 = inlined_call_operand.vmem [shape: s32[8,1], index: 0, kind: input, shape index: {}]   ;;  %s1803_s1 = inlined_call_operand.vmem [shape: f32[10,512], index: 1, kind: input, shape index: {}]   ;;  %s1804_s2 = inlined_call_operand.vmem [shape: f32[1,512], index: 2, kind: input, shape index: {}]   ;;  %s1805_s3 = inlined_call_operand.vmem [shape: f32[1,512], index: 3, kind: input, shape index: {}]   ;;  %s1806_s4 = inlined_call_operand.vmem [shape: f32[1,512], index: 4, kind: input, shape index: {}]   ;;  %s1807_s5 = inlined_call_operand.vmem [shape: f32[512,32], index: 5, kind: input, shape index: {}]   ;;  %s1808_s6 = inlined_call_operand.vmem [shape: f32[1,32], index: 6, kind: input, shape index: {}]   ;;  %s1809_s7 = inlined_call_operand.vmem [shape: f32[512,32], index: 7, kind: input, shape index: {}]   ;;  %s1810_s8 = inlined_call_operand.vmem [shape: f32[1,32], index: 8, kind: input, shape index: {}]   ;;  %s1811_s9 = inlined_call_operand.vmem [shape: f32[8,32], index: 9, kind: input, shape index: {}]   ;;  %s1812_s10 = inlined_call_operand.hbm [shape: f32[8,32], index: 10, kind: output, shape index: {0}]   ;;  %s1813_s11 = inlined_call_operand.hbm [shape: f32[8,32], index: 11, kind: output, shape index: {1}]   ;;  %s1814_s12 = inlined_call_operand.hbm [shape: f32[8,32], index: 12, kind: output, shape index: {2}]  }
   0x1   :  { %v42_v0 = vld [vmem:[%s1802_s0] sm:$0xff]  ;;  %v50_v1 = vld [vmem:[%s1803_s1 + $0x8] sm:$0xff]  ;;  %1144 = vset.pattern.permute.xlu0 %v1227_v3  ;;  %v52_v5 = vld [vmem:[%s1803_s1 + $0x18] sm:$0xff]  ;;  %160 = vmatprep.mubr.f32.mxu0 %v1229_v11 }
   0x2   :  { %v54_v2 = vld [vmem:[%s1803_s1 + $0x28] sm:$0x3]  ;;  %v56_v6 = vld [vmem:[%s1803_s1 + $0x38] sm:$0x3]  ;;  %v49_v7 = vld [vmem:[%s1803_s1] sm:$0xff]  ;;  %44 = vperm.xlu0 %1144, %v42_v0   ;;  %231 = vmatprep.mubr.f32.mxu1 %v1229_v11 }
   0x3   :  { %v998_v4 = vpack.c.bf16 %v54_v2, %v50_v1  ;;  %vm999_vm2 = vmpackc.low %vm83_vm0, %vm1228_vm1  ;;  %v1004_v8 = vpack.c.bf16 %v56_v6, %v52_v5  ;;  %v53_v9 = vld [vmem:[%s1803_s1 + $0x20] sm:$0x3]  ;;  %v51_v10 = vld [vmem:[%s1803_s1 + $0x10] sm:$0xff] }
   0x4   :  { %v1001_v12 = vpack.c.bf16 %v53_v9, %v49_v7  ;;  %v55_v13 = vld [vmem:[%s1803_s1 + $0x30] sm:$0x3] }
   0x5   :  { %1000 = vmatprep.subr.msk.bf16.mxu0 %vm999_vm2, %v998_v4 }
   0x6   :  { %19 = vsyncpa [#allocation5], 0  ;;  %1006 = vmatprep.subr.msk.bf16.mxu1 %vm999_vm2, %v1004_v8  ;;  %v1007_v14 = vpack.c.bf16 %v55_v13, %v51_v10  ;;  %1003 = vmatpush1.bf16.msk.msra.mxu0 %vm999_vm2, %v1001_v12  ;;  %v40_v15 = vlaneseq  ;;  %vm79_vm3 = vcmask 80896   ;;  %v387_v19 = vld [vmem:[%s1807_s5 + $0x80] sm:$0xff]  ;;  %v388_v20 = vld [vmem:[%s1807_s5 + $0x88] sm:$0xff]  ;;  %vm804_vm5 = vcmask 261120  }
   0x7   :  { %v419_v21 = vld [vmem:[%s1807_s5 + $0x180] sm:$0xff]  ;;  %v1010_v22 = vpack.c.bf16 %v388_v20, %v387_v19  ;;  %v420_v23 = vld [vmem:[%s1807_s5 + $0x188] sm:$0xff]  ;;  %v389_v31 = vld [vmem:[%s1807_s5 + $0x90] sm:$0xff] }
   0x8   :  { %1009 = vmatpush1.bf16.msk.msra.mxu1 %vm999_vm2, %v1007_v14  ;;  %v41_v16 = vand.u32 127, %v40_v15  ;;  %v371_v24 = vld [vmem:[%s1807_s5] sm:$0xff]  ;;  %v372_v25 = vld [vmem:[%s1807_s5 + $0x8] sm:$0xff]  ;;  %v1042_v26 = vpack.c.bf16 %v420_v23, %v419_v21  ;;  %v390_v32 = vld [vmem:[%s1807_s5 + $0x98] sm:$0xff] }
   0x9   :  { %v1012_v27 = vpack.c.bf16 %v372_v25, %v371_v24  ;;  %v403_v28 = vld [vmem:[%s1807_s5 + $0x100] sm:$0xff]  ;;  %v404_v29 = vld [vmem:[%s1807_s5 + $0x108] sm:$0xff]  ;;  %1011 = vmatprep.subr.bf16.mxu0 %v1010_v22  ;;  %v421_v33 = vld [vmem:[%s1807_s5 + $0x190] sm:$0xff]  ;;  %v1014_v34 = vpack.c.bf16 %v390_v32, %v389_v31 }
   0xa   :  { %v1044_v30 = vpack.c.bf16 %v404_v29, %v403_v28  ;;  %1043 = vmatprep.subr.bf16.mxu1 %v1042_v26  ;;  %v422_v35 = vld [vmem:[%s1807_s5 + $0x198] sm:$0xff]  ;;  %v373_v36 = vld [vmem:[%s1807_s5 + $0x10] sm:$0xff]  ;;  %v391_v43 = vld [vmem:[%s1807_s5 + $0xa0] sm:$0xff] }
   0xb   :  { %v374_v37 = vld [vmem:[%s1807_s5 + $0x18] sm:$0xff]  ;;  %v1046_v38 = vpack.c.bf16 %v422_v35, %v421_v33  ;;  %v405_v40 = vld [vmem:[%s1807_s5 + $0x110] sm:$0xff]  ;;  %v392_v44 = vld [vmem:[%s1807_s5 + $0xa8] sm:$0xff] }
   0xc   :  { %v1016_v39 = vpack.c.bf16 %v374_v37, %v373_v36  ;;  %v406_v41 = vld [vmem:[%s1807_s5 + $0x118] sm:$0xff]  ;;  %v423_v45 = vld [vmem:[%s1807_s5 + $0x1a0] sm:$0xff]  ;;  %v1018_v46 = vpack.c.bf16 %v392_v44, %v391_v43  ;;  %v424_v47 = vld [vmem:[%s1807_s5 + $0x1a8] sm:$0xff] }
   0xd   :  { %v1048_v42 = vpack.c.bf16 %v406_v41, %v405_v40  ;;  %v375_v48 = vld [vmem:[%s1807_s5 + $0x20] sm:$0xff]  ;;  %v1050_v49 = vpack.c.bf16 %v424_v47, %v423_v45  ;;  %v376_v50 = vld [vmem:[%s1807_s5 + $0x28] sm:$0xff]  ;;  %v393_v55 = vld [vmem:[%s1807_s5 + $0xb0] sm:$0xff] }
   0xe   :  { %v407_v51 = vld [vmem:[%s1807_s5 + $0x120] sm:$0xff]  ;;  %v408_v52 = vld [vmem:[%s1807_s5 + $0x128] sm:$0xff]  ;;  %v1020_v53 = vpack.c.bf16 %v376_v50, %v375_v48  ;;  %v394_v56 = vld [vmem:[%s1807_s5 + $0xb8] sm:$0xff] }
   0xf   :  { %v1052_v54 = vpack.c.bf16 %v408_v52, %v407_v51  ;;  %v425_v57 = vld [vmem:[%s1807_s5 + $0x1b0] sm:$0xff]  ;;  %v1022_v58 = vpack.c.bf16 %v394_v56, %v393_v55  ;;  %v426_v59 = vld [vmem:[%s1807_s5 + $0x1b8] sm:$0xff]  ;;  %v395_v3 = vld [vmem:[%s1807_s5 + $0xc0] sm:$0xff] }
  0x10   :  { %v377_v60 = vld [vmem:[%s1807_s5 + $0x30] sm:$0xff]  ;;  %v378_v61 = vld [vmem:[%s1807_s5 + $0x38] sm:$0xff]  ;;  %v1054_v62 = vpack.c.bf16 %v426_v59, %v425_v57  ;;  %v396_v4 = vld [vmem:[%s1807_s5 + $0xc8] sm:$0xff] }
  0x11   :  { %v1024_v63 = vpack.c.bf16 %v378_v61, %v377_v60  ;;  %v409_v0 = vld [vmem:[%s1807_s5 + $0x130] sm:$0xff]  ;;  %v410_v1 = vld [vmem:[%s1807_s5 + $0x138] sm:$0xff]  ;;  %v427_v5 = vld [vmem:[%s1807_s5 + $0x1c0] sm:$0xff]  ;;  %v1026_v6 = vpack.c.bf16 %v396_v4, %v395_v3 }
  0x12   :  { %v1056_v2 = vpack.c.bf16 %v410_v1, %v409_v0  ;;  %v428_v7 = vld [vmem:[%s1807_s5 + $0x1c8] sm:$0xff]  ;;  %v379_v8 = vld [vmem:[%s1807_s5 + $0x40] sm:$0xff]  ;;  %v430_v20 = vld [vmem:[%s1807_s5 + $0x1d8] sm:$0xff] }
  0x13   :  { %v380_v9 = vld [vmem:[%s1807_s5 + $0x48] sm:$0xff]  ;;  %v1058_v10 = vpack.c.bf16 %v428_v7, %v427_v5  ;;  %v411_v12 = vld [vmem:[%s1807_s5 + $0x140] sm:$0xff]  ;;  %v381_v21 = vld [vmem:[%s1807_s5 + $0x50] sm:$0xff] }
  0x14   :  { %v412_v13 = vld [vmem:[%s1807_s5 + $0x148] sm:$0xff]  ;;  %v382_v22 = vld [vmem:[%s1807_s5 + $0x58] sm:$0xff]  ;;  %v413_v25 = vld [vmem:[%s1807_s5 + $0x150] sm:$0xff] }
  0x15   :  { %v1060_v14 = vpack.c.bf16 %v412_v13, %v411_v12  ;;  %v1032_v24 = vpack.c.bf16 %v382_v22, %v381_v21  ;;  %v414_v26 = vld [vmem:[%s1807_s5 + $0x158] sm:$0xff]  ;;  %v399_v28 = vld [vmem:[%s1807_s5 + $0xe0] sm:$0xff]  ;;  %v400_v29 = vld [vmem:[%s1807_s5 + $0xe8] sm:$0xff] }
  0x16   :  { %v1034_v31 = vpack.c.bf16 %v400_v29, %v399_v28  ;;  %v432_v32 = vld [vmem:[%s1807_s5 + $0x1e8] sm:$0xff]  ;;  %v383_v33 = vld [vmem:[%s1807_s5 + $0x60] sm:$0xff]  ;;  %v401_v40 = vld [vmem:[%s1807_s5 + $0xf0] sm:$0xff] }
  0x17   :  { %v415_v37 = vld [vmem:[%s1807_s5 + $0x160] sm:$0xff]  ;;  %v402_v41 = vld [vmem:[%s1807_s5 + $0xf8] sm:$0xff]  ;;  %v385_v45 = vld [vmem:[%s1807_s5 + $0x70] sm:$0xff] }
  0x18   :  { %v1038_v43 = vpack.c.bf16 %v402_v41, %v401_v40  ;;  %v434_v44 = vld [vmem:[%s1807_s5 + $0x1f8] sm:$0xff]  ;;  %v598_v52 = vld [vmem:[%s1809_s7 + $0x80] sm:$0xff]  ;;  %v631_v56 = vld [vmem:[%s1809_s7 + $0x188] sm:$0xff] }
  0x19   :  { %v418_v50 = vld [vmem:[%s1807_s5 + $0x178] sm:$0xff]  ;;  %v57_v61 = vld [vmem:[%s1804_s2] sm:$0xf] }
  0x81   :  { %v45_v17 = vpop.permute.xlu0 %44 }
  0x82   :  { %vm46_vm4 = vcmp.eq.s32.totalorder %v41_v16, %v45_v17  ;;  %v397_v16 = vld [vmem:[%s1807_s5 + $0xd0] sm:$0xff]  ;;  %v398_v17 = vld [vmem:[%s1807_s5 + $0xd8] sm:$0xff] }
  0x83   :  { %v849_v18 = vsel %vm46_vm4, 1.0, %v1229_v11  ;;  %v1028_v11 = vpack.c.bf16 %v380_v9, %v379_v8  ;;  %v1030_v19 = vpack.c.bf16 %v398_v17, %v397_v16 }
  0x84   :  { %852 = vmatmul.mubr.msk.f32.vlgmr.msra.gmra.mrb[0].mxu0 %vm79_vm3, %v849_v18  ;;  %855 = vmatmul.mubr.msk.f32.vlgmr.msra.gmra.mrb[0].mxu1 %vm79_vm3, %v849_v18  ;;  %v429_v18 = vld [vmem:[%s1807_s5 + $0x1d0] sm:$0xff] }
  0x85   :  { %1013 = vmatpush3.bf16.msra.mxu0 %v1012_v27  ;;  %1045 = vmatpush3.bf16.msra.mxu1 %v1044_v30  ;;  %v1062_v23 = vpack.c.bf16 %v430_v20, %v429_v18  ;;  %v1064_v27 = vpack.c.bf16 %v414_v26, %v413_v25  ;;  %v431_v30 = vld [vmem:[%s1807_s5 + $0x1e0] sm:$0xff] }
  0x86   :  { %1015 = vmatprep.subr.bf16.mxu0 %v1014_v34  ;;  %1047 = vmatprep.subr.bf16.mxu1 %v1046_v38  ;;  %v384_v34 = vld [vmem:[%s1807_s5 + $0x68] sm:$0xff]  ;;  %v1066_v35 = vpack.c.bf16 %v432_v32, %v431_v30 }
  0x87   :  { %v1036_v36 = vpack.c.bf16 %v384_v34, %v383_v33  ;;  %v416_v38 = vld [vmem:[%s1807_s5 + $0x168] sm:$0xff] }
  0x89   :  { %1017 = vmatpush3.bf16.msra.mxu0 %v1016_v39  ;;  %1049 = vmatpush3.bf16.msra.mxu1 %v1048_v42  ;;  %v1068_v39 = vpack.c.bf16 %v416_v38, %v415_v37  ;;  %v433_v42 = vld [vmem:[%s1807_s5 + $0x1f0] sm:$0xff] }
  0x8a   :  { %1019 = vmatprep.subr.bf16.mxu0 %v1018_v46  ;;  %1051 = vmatprep.subr.bf16.mxu1 %v1050_v49  ;;  %v386_v46 = vld [vmem:[%s1807_s5 + $0x78] sm:$0xff]  ;;  %v1070_v47 = vpack.c.bf16 %v434_v44, %v433_v42  ;;  %v417_v49 = vld [vmem:[%s1807_s5 + $0x170] sm:$0xff] }
  0x8b   :  { %v1040_v48 = vpack.c.bf16 %v386_v46, %v385_v45  ;;  %v1072_v51 = vpack.c.bf16 %v418_v50, %v417_v49 }
  0x8d   :  { %1021 = vmatpush3.bf16.msra.mxu0 %v1020_v53  ;;  %1053 = vmatpush3.bf16.msra.mxu1 %v1052_v54  ;;  %v599_v53 = vld [vmem:[%s1809_s7 + $0x88] sm:$0xff]  ;;  %v630_v54 = vld [vmem:[%s1809_s7 + $0x180] sm:$0xff] }
  0x8e   :  { %1023 = vmatprep.subr.bf16.mxu0 %v1022_v58  ;;  %1055 = vmatprep.subr.bf16.mxu1 %v1054_v62  ;;  %v1074_v55 = vpack.c.bf16 %v599_v53, %v598_v52  ;;  %v1106_v57 = vpack.c.bf16 %v631_v56, %v630_v54  ;;  %v60_v58 = vshrl.u32 %v40_v15, 7 }
  0x90   :  { %v1531_v59 = vsub.s32 0, %v60_v58  ;;  %v1533_v60 = vsub.s32 2, %v60_v58  ;;  %v1538_v62 = vsub.s32 1, %v60_v58 }
  0x91   :  { %1025 = vmatpush3.bf16.msra.mxu0 %v1024_v63  ;;  %1057 = vmatpush3.bf16.msra.mxu1 %v1056_v2  ;;  %v1540_v63 = vsub.s32 3, %v60_v58 }
  0x92   :  { %1027 = vmatprep.subr.bf16.mxu0 %v1026_v6  ;;  %1059 = vmatprep.subr.bf16.mxu1 %v1058_v10  ;;  %v62_v0 = vrot.slane %v57_v61, %v1531_v59  ;;  %v70_v1 = vrot.slane %v57_v61, %v1533_v60  ;;  %v66_v2 = vrot.slane %v57_v61, %v1538_v62 }
  0x93   :  { %v74_v15 = vrot.slane %v57_v61, %v1540_v63 }
  0x95   :  { %1029 = vmatpush3.bf16.msra.mxu0 %v1028_v11  ;;  %1061 = vmatpush3.bf16.msra.mxu1 %v1060_v14 }
  0x96   :  { %1031 = vmatprep.subr.bf16.mxu0 %v1030_v19  ;;  %1063 = vmatprep.subr.bf16.mxu1 %v1062_v23 }
  0x99   :  { %1033 = vmatpush3.bf16.msra.mxu0 %v1032_v24  ;;  %1065 = vmatpush3.bf16.msra.mxu1 %v1064_v27 }
  0x9a   :  { %1035 = vmatprep.subr.bf16.mxu0 %v1034_v31  ;;  %1067 = vmatprep.subr.bf16.mxu1 %v1066_v35 }
  0x9d   :  { %1037 = vmatpush3.bf16.msra.mxu0 %v1036_v36  ;;  %1069 = vmatpush3.bf16.msra.mxu1 %v1068_v39 }
  0x9e   :  { %1039 = vmatprep.subr.bf16.mxu0 %v1038_v43  ;;  %1071 = vmatprep.subr.bf16.mxu1 %v1070_v47 }
  0xa1   :  { %1041 = vmatpush3.bf16.msra.mxu0 %v1040_v48  ;;  %1073 = vmatpush3.bf16.msra.mxu1 %v1072_v51 }
  0xa2   :  { %1075 = vmatprep.subr.bf16.mxu0 %v1074_v55  ;;  %1107 = vmatprep.subr.bf16.mxu1 %v1106_v57 }
 0x157   :  { %v162_v3 = vpop.f32.mrb[0].mxu0  ;;  %v233_v4 = vpop.f32.mrb[0].mxu1 }
 0x158   :  { %v163_v5 = vadd.f32 %v162_v3, %v62_v0  ;;  %v234_v6 = vadd.f32 %v233_v4, %v70_v1  ;;  %v164_v7 = vpop.f32.mrb[1].mxu0  ;;  %v235_v8 = vpop.f32.mrb[1].mxu1 }
 0x159   :  { %v165_v9 = vadd.f32 %v164_v7, %v66_v2  ;;  %v236_v10 = vadd.f32 %v235_v8, %v74_v15 }
 0x15a   :  { %v238_v11 = vrot.slane %v163_v5, 4  ;;  %v250_v12 = vrot.slane %v234_v6, 4 }
 0x15b   :  { %v244_v13 = vrot.slane %v165_v9, 4  ;;  %v256_v14 = vrot.slane %v236_v10, 4 }
 0x15c   :  { %v239_v16 = vadd.f32 %v238_v11, %v163_v5  ;;  %v251_v17 = vadd.f32 %v250_v12, %v234_v6 }
 0x15d   :  { %v245_v18 = vadd.f32 %v244_v13, %v165_v9  ;;  %v257_v19 = vadd.f32 %v256_v14, %v236_v10 }
 0x15e   :  { %v240_v20 = vrot.slane %v239_v16, 2  ;;  %v252_v21 = vrot.slane %v251_v17, 2 }
 0x15f   :  { %v246_v22 = vrot.slane %v245_v18, 2  ;;  %v258_v23 = vrot.slane %v257_v19, 2 }
 0x160   :  { %v241_v24 = vadd.f32 %v240_v20, %v239_v16  ;;  %v253_v25 = vadd.f32 %v252_v21, %v251_v17  ;;  %v303_v20 = vld [vmem:[%s1805_s3] sm:$0xf] }
 0x161   :  { %v247_v26 = vadd.f32 %v246_v22, %v245_v18  ;;  %v259_v27 = vadd.f32 %v258_v23, %v257_v19  ;;  %v341_v21 = vld [vmem:[%s1806_s4] sm:$0xf]  ;;  %v320_v22 = vrot.slane %v303_v20, %v1531_v59 }
 0x162   :  { %v242_v28 = vrot.slane %v241_v24, 1  ;;  %v254_v29 = vrot.slane %v253_v25, 1 }
 0x163   :  { %v248_v30 = vrot.slane %v247_v26, 1  ;;  %v260_v31 = vrot.slane %v259_v27, 1 }
 0x164   :  { %v243_v32 = vadd.f32 %v242_v28, %v241_v24  ;;  %v255_v33 = vadd.f32 %v254_v29, %v253_v25  ;;  %v328_v24 = vrot.slane %v303_v20, %v1533_v60  ;;  %v346_v28 = vrot.slane %v341_v21, %v1531_v59 }
 0x165   :  { %v249_v34 = vadd.f32 %v248_v30, %v247_v26  ;;  %v261_v35 = vadd.f32 %v260_v31, %v259_v27  ;;  %v324_v27 = vrot.slane %v303_v20, %v1538_v62  ;;  %v332_v31 = vrot.slane %v303_v20, %v1540_v63 }
 0x166   :  { %v263_v36 = vmul.f32 0.125, %v243_v32  ;;  %v265_v37 = vmul.f32 0.125, %v255_v33  ;;  %v354_v32 = vrot.slane %v341_v21, %v1533_v60  ;;  %v583_v60 = vld [vmem:[%s1809_s7 + $0x8] sm:$0xff] }
 0x167   :  { %v264_v38 = vmul.f32 0.125, %v249_v34  ;;  %v266_v39 = vmul.f32 0.125, %v261_v35 }
 0x168   :  { %v267_v40 = vsub.f32 %v163_v5, %v263_v36  ;;  %v269_v41 = vsub.f32 %v234_v6, %v265_v37  ;;  %v350_v36 = vrot.slane %v341_v21, %v1538_v62  ;;  %v614_v62 = vld [vmem:[%s1809_s7 + $0x100] sm:$0xff] }
 0x169   :  { %v268_v42 = vsub.f32 %v165_v9, %v264_v38  ;;  %v270_v43 = vsub.f32 %v236_v10, %v266_v39  ;;  %v358_v39 = vrot.slane %v341_v21, %v1540_v63  ;;  %v615_v63 = vld [vmem:[%s1809_s7 + $0x108] sm:$0xff]  ;;  %v588_v21 = vld [vmem:[%s1809_s7 + $0x30] sm:$0xff] }
 0x16a   :  { %v271_v44 = vmul.f32 %v267_v40, %v267_v40  ;;  %v273_v45 = vmul.f32 %v269_v41, %v269_v41 }
 0x16b   :  { %v272_v46 = vmul.f32 %v268_v42, %v268_v42  ;;  %v274_v47 = vmul.f32 %v270_v43, %v270_v43 }
 0x16c   :  { %v275_v48 = vrot.slane %v271_v44, 4  ;;  %v287_v49 = vrot.slane %v273_v45, 4 }
 0x16d   :  { %v281_v50 = vrot.slane %v272_v46, 4  ;;  %v293_v51 = vrot.slane %v274_v47, 4 }
 0x16e   :  { %v276_v52 = vadd.f32 %v275_v48, %v271_v44  ;;  %v288_v53 = vadd.f32 %v287_v49, %v273_v45 }
 0x16f   :  { %v282_v54 = vadd.f32 %v281_v50, %v272_v46  ;;  %v294_v55 = vadd.f32 %v293_v51, %v274_v47  ;;  %v600_v46 = vld [vmem:[%s1809_s7 + $0x90] sm:$0xff]  ;;  %v601_v47 = vld [vmem:[%s1809_s7 + $0x98] sm:$0xff] }
 0x170   :  { %v277_v56 = vrot.slane %v276_v52, 2  ;;  %v289_v57 = vrot.slane %v288_v53, 2  ;;  %v632_v50 = vld [vmem:[%s1809_s7 + $0x190] sm:$0xff]  ;;  %v633_v51 = vld [vmem:[%s1809_s7 + $0x198] sm:$0xff] }
 0x171   :  { %v283_v58 = vrot.slane %v282_v54, 2  ;;  %v295_v61 = vrot.slane %v294_v55, 2 }
 0x172   :  { %v278_v0 = vadd.f32 %v277_v56, %v276_v52  ;;  %v290_v1 = vadd.f32 %v289_v57, %v288_v53  ;;  %v585_v56 = vld [vmem:[%s1809_s7 + $0x18] sm:$0xff]  ;;  %v616_v57 = vld [vmem:[%s1809_s7 + $0x110] sm:$0xff] }
 0x173   :  { %v284_v2 = vadd.f32 %v283_v58, %v282_v54  ;;  %v296_v15 = vadd.f32 %v295_v61, %v294_v55  ;;  %v1108_v54 = vpack.c.bf16 %v615_v63, %v614_v62  ;;  %v584_v55 = vld [vmem:[%s1809_s7 + $0x10] sm:$0xff]  ;;  %v1078_v61 = vpack.c.bf16 %v601_v47, %v600_v46  ;;  %v593_v63 = vld [vmem:[%s1809_s7 + $0x58] sm:$0xff] }
 0x174   :  { %v279_v3 = vrot.slane %v278_v0, 1  ;;  %v291_v4 = vrot.slane %v290_v1, 1  ;;  %v592_v62 = vld [vmem:[%s1809_s7 + $0x50] sm:$0xff]  ;;  %v625_v47 = vld [vmem:[%s1809_s7 + $0x158] sm:$0xff] }
 0x175   :  { %v285_v5 = vrot.slane %v284_v2, 1  ;;  %v297_v6 = vrot.slane %v296_v15, 1 }
 0x176   :  { %v280_v7 = vadd.f32 %v279_v3, %v278_v0  ;;  %v292_v8 = vadd.f32 %v291_v4, %v290_v1  ;;  %v617_v0 = vld [vmem:[%s1809_s7 + $0x118] sm:$0xff]  ;;  %v602_v1 = vld [vmem:[%s1809_s7 + $0xa0] sm:$0xff]  ;;  %v635_v4 = vld [vmem:[%s1809_s7 + $0x1a8] sm:$0xff] }
 0x177   :  { %v286_v9 = vadd.f32 %v285_v5, %v284_v2  ;;  %v298_v10 = vadd.f32 %v297_v6, %v296_v15  ;;  %v603_v2 = vld [vmem:[%s1809_s7 + $0xa8] sm:$0xff]  ;;  %v1110_v15 = vpack.c.bf16 %v633_v51, %v632_v50  ;;  %v634_v3 = vld [vmem:[%s1809_s7 + $0x1a0] sm:$0xff]  ;;  %v1080_v5 = vpack.c.bf16 %v585_v56, %v584_v55 }
 0x178   :  { %v299_v11 = vmul.f32 0.125, %v280_v7  ;;  %v301_v12 = vmul.f32 0.125, %v292_v8  ;;  %v1112_v6 = vpack.c.bf16 %v617_v0, %v616_v57  ;;  %v1082_v7 = vpack.c.bf16 %v603_v2, %v602_v1  ;;  %v586_v8 = vld [vmem:[%s1809_s7 + $0x20] sm:$0xff]  ;;  %v643_v51 = vld [vmem:[%s1809_s7 + $0x1e8] sm:$0xff]  ;;  %v612_v2 = vld [vmem:[%s1809_s7 + $0xf0] sm:$0xff] }
 0x179   :  { %v300_v13 = vmul.f32 0.125, %v286_v9  ;;  %v302_v14 = vmul.f32 0.125, %v298_v10  ;;  %v587_v9 = vld [vmem:[%s1809_s7 + $0x28] sm:$0xff]  ;;  %v618_v10 = vld [vmem:[%s1809_s7 + $0x120] sm:$0xff] }
 0x17a   :  { %v304_v16 = vadd.f32 1e-05, %v299_v11  ;;  %v306_v17 = vadd.f32 1e-05, %v301_v12  ;;  %v1114_v11 = vpack.c.bf16 %v635_v4, %v634_v3  ;;  %v619_v12 = vld [vmem:[%s1809_s7 + $0x128] sm:$0xff]  ;;  %v642_v50 = vld [vmem:[%s1809_s7 + $0x1e0] sm:$0xff] }
 0x17b   :  { %v305_v18 = vadd.f32 1e-05, %v300_v13  ;;  %v307_v19 = vadd.f32 1e-05, %v302_v14  ;;  %v604_v13 = vld [vmem:[%s1809_s7 + $0xb0] sm:$0xff]  ;;  %v605_v14 = vld [vmem:[%s1809_s7 + $0xb8] sm:$0xff]  ;;  %v1130_v0 = vpack.c.bf16 %v643_v51, %v642_v50 }
 0x17c   :  { %1145 = vrsqrt.f32 %v304_v16  ;;  %v636_v16 = vld [vmem:[%s1809_s7 + $0x1b0] sm:$0xff]  ;;  %v1086_v20 = vpack.c.bf16 %v605_v14, %v604_v13  ;;  %v594_v56 = vld [vmem:[%s1809_s7 + $0x60] sm:$0xff]  ;;  %v595_v57 = vld [vmem:[%s1809_s7 + $0x68] sm:$0xff] }
 0x17d   :  { %1147 = vrsqrt.f32 %v306_v17  ;;  %v637_v17 = vld [vmem:[%s1809_s7 + $0x1b8] sm:$0xff]  ;;  %v627_v1 = vld [vmem:[%s1809_s7 + $0x168] sm:$0xff]  ;;  %v644_v3 = vld [vmem:[%s1809_s7 + $0x1f0] sm:$0xff] }
 0x17e   :  { %1149 = vrsqrt.f32 %v305_v18  ;;  %v1084_v18 = vpack.c.bf16 %v587_v9, %v586_v8  ;;  %v645_v4 = vld [vmem:[%s1809_s7 + $0x1f8] sm:$0xff]  ;;  %v596_v8 = vld [vmem:[%s1809_s7 + $0x70] sm:$0xff] }
 0x17f   :  { %1151 = vrsqrt.f32 %v307_v19  ;;  %v1116_v19 = vpack.c.bf16 %v619_v12, %v618_v10  ;;  %v597_v9 = vld [vmem:[%s1809_s7 + $0x78] sm:$0xff]  ;;  %v1134_v10 = vpack.c.bf16 %v645_v4, %v644_v3 }
 0x180   :  { %v629_v12 = vld [vmem:[%s1809_s7 + $0x178] sm:$0xff]  ;;  %v1104_v13 = vpack.c.bf16 %v597_v9, %v596_v8 }
 0x186   :  { %v1146_v23 = vpop.eup %1145 }
 0x187   :  { %v1148_v25 = vpop.eup %1147  ;;  %v312_v26 = vmul.f32 %v1146_v23, %v267_v40  ;;  %v620_v23 = vld [vmem:[%s1809_s7 + $0x130] sm:$0xff] }
 0x188   :  { %v1150_v29 = vpop.eup %1149  ;;  %v314_v30 = vmul.f32 %v1148_v25, %v269_v41  ;;  %v582_v41 = vld [vmem:[%s1809_s7] sm:$0xff]  ;;  %v621_v25 = vld [vmem:[%s1809_s7 + $0x138] sm:$0xff] }
 0x189   :  { %v1152_v33 = vpop.eup %1151  ;;  %v337_v34 = vmul.f32 %v320_v22, %v312_v26  ;;  %v313_v35 = vmul.f32 %v1150_v29, %v268_v42  ;;  %v1076_v49 = vpack.c.bf16 %v583_v60, %v582_v41  ;;  %v589_v22 = vld [vmem:[%s1809_s7 + $0x38] sm:$0xff]  ;;  %v606_v26 = vld [vmem:[%s1809_s7 + $0xc0] sm:$0xff]  ;;  %v639_v29 = vld [vmem:[%s1809_s7 + $0x1c8] sm:$0xff] }
 0x18a   :  { %v339_v37 = vmul.f32 %v328_v24, %v314_v30  ;;  %v315_v38 = vmul.f32 %v1152_v33, %v270_v43  ;;  %v1118_v24 = vpack.c.bf16 %v637_v17, %v636_v16  ;;  %v1088_v30 = vpack.c.bf16 %v589_v22, %v588_v21  ;;  %v590_v33 = vld [vmem:[%s1809_s7 + $0x40] sm:$0xff] }
 0x18b   :  { %v338_v40 = vmul.f32 %v324_v27, %v313_v35  ;;  %v1560_v44 = vadd.f32 %v346_v28, %v337_v34  ;;  %v607_v27 = vld [vmem:[%s1809_s7 + $0xc8] sm:$0xff]  ;;  %v638_v28 = vld [vmem:[%s1809_s7 + $0x1c0] sm:$0xff] }
 0x18c   :  { %v340_v45 = vmul.f32 %v332_v31, %v315_v38  ;;  %v1562_v59 = vadd.f32 %v354_v32, %v339_v37  ;;  %v1120_v31 = vpack.c.bf16 %v621_v25, %v620_v23  ;;  %v1090_v32 = vpack.c.bf16 %v607_v27, %v606_v26  ;;  %v591_v34 = vld [vmem:[%s1809_s7 + $0x48] sm:$0xff]  ;;  %v622_v35 = vld [vmem:[%s1809_s7 + $0x140] sm:$0xff]  ;;  %v608_v38 = vld [vmem:[%s1809_s7 + $0xd0] sm:$0xff] }
 0x18d   :  { %v364_v42 = vadd.f32 %v350_v36, %v338_v40  ;;  %v367_v53 = vmax.f32 %v1560_v44, 0.0  ;;  %v1122_v36 = vpack.c.bf16 %v639_v29, %v638_v28  ;;  %v623_v37 = vld [vmem:[%s1809_s7 + $0x148] sm:$0xff]  ;;  %v640_v40 = vld [vmem:[%s1809_s7 + $0x1d0] sm:$0xff]  ;;  %v1092_v41 = vpack.c.bf16 %v591_v34, %v590_v33 }
 0x18e   :  { %v366_v43 = vadd.f32 %v358_v39, %v340_v45  ;;  %v369_v58 = vmax.f32 %v1562_v59, 0.0  ;;  %v609_v39 = vld [vmem:[%s1809_s7 + $0xd8] sm:$0xff]  ;;  %v1124_v60 = vpack.c.bf16 %v623_v37, %v622_v35 }
 0x18f   :  { %v368_v48 = vmax.f32 %v364_v42, 0.0  ;;  %v641_v45 = vld [vmem:[%s1809_s7 + $0x1d8] sm:$0xff]  ;;  %v1094_v42 = vpack.c.bf16 %v609_v39, %v608_v38 }
 0x190   :  { %v370_v52 = vmax.f32 %v366_v43, 0.0  ;;  %v624_v43 = vld [vmem:[%s1809_s7 + $0x150] sm:$0xff]  ;;  %v1126_v46 = vpack.c.bf16 %v641_v45, %v640_v40 }
 0x191   :  { %506 = vmatprep.mubr.f32.mxu0 %v368_v48 }
 0x192   :  { %576 = vmatprep.mubr.f32.mxu1 %v370_v52  ;;  %507 = vmatmul.mubr.f32.vlgmr.msra.gmra.mrb[2].mxu0 %v367_v53 }
 0x193   :  { %577 = vmatmul.mubr.f32.vlgmr.msra.gmra.mrb[2].mxu1 %v369_v58  ;;  %1077 = vmatpush3.bf16.msra.mxu0 %v1076_v49  ;;  %v611_v49 = vld [vmem:[%s1809_s7 + $0xe8] sm:$0xff] }
 0x194   :  { %1109 = vmatpush3.bf16.msra.mxu1 %v1108_v54  ;;  %717 = vmatprep.mubr.f32.mxu0 %v368_v48  ;;  %v610_v48 = vld [vmem:[%s1809_s7 + $0xe0] sm:$0xff]  ;;  %v1128_v54 = vpack.c.bf16 %v625_v47, %v624_v43 }
 0x195   :  { %787 = vmatprep.mubr.f32.mxu1 %v370_v52  ;;  %1079 = vmatprep.subr.bf16.mxu0 %v1078_v61  ;;  %v1096_v52 = vpack.c.bf16 %v593_v63, %v592_v62  ;;  %v1098_v55 = vpack.c.bf16 %v611_v49, %v610_v48  ;;  %v626_v61 = vld [vmem:[%s1809_s7 + $0x160] sm:$0xff] }
 0x196   :  { %1111 = vmatprep.subr.bf16.mxu1 %v1110_v15  ;;  %v613_v15 = vld [vmem:[%s1809_s7 + $0xf8] sm:$0xff] }
 0x197   :  { %1081 = vmatpush3.bf16.msra.mxu0 %v1080_v5  ;;  %v1100_v5 = vpack.c.bf16 %v595_v57, %v594_v56 }
 0x198   :  { %1113 = vmatpush3.bf16.msra.mxu1 %v1112_v6  ;;  %1083 = vmatprep.subr.bf16.mxu0 %v1082_v7  ;;  %v1132_v6 = vpack.c.bf16 %v627_v1, %v626_v61  ;;  %v1102_v7 = vpack.c.bf16 %v613_v15, %v612_v2 }
 0x199   :  { %1115 = vmatprep.subr.bf16.mxu1 %v1114_v11  ;;  %v628_v11 = vld [vmem:[%s1809_s7 + $0x170] sm:$0xff]  ;;  %s1230_s7 = smov [#allocation4]  }
 0x19a   :  { %v1136_v14 = vpack.c.bf16 %v629_v12, %v628_v11  ;;  %s824_s20 = sshll.u32 %s1230_s7, 4  ;;  %s825_s20 = int_to_ptr.vmem [resolvable:$true] %s824_s20 }
 0x19b   :  { %1085 = vmatpush3.bf16.msra.mxu0 %v1084_v18  ;;  %v856_v18 = vld [vmem:[%s1808_s6] ss:$0 sm:$0xff]  ;;  %s1157_s21 = scalar_lea.vmem %s825_s20, 128  ;;  %p1162_p1 = scmp.lt.s32.totalorder %s825_s20, %s825_s20 }
 0x19c   :  { %1117 = vmatpush3.bf16.msra.mxu1 %v1116_v19  ;;  %1087 = vmatprep.subr.bf16.mxu0 %v1086_v20  ;;  %p1158_p0 = scmp.ne.s32.totalorder %s825_s20, %s1157_s21  ;;  %p1163_p2 = scmp.lt.s32.totalorder %s1157_s21, %s1157_s21 }
 0x19d   :  { %1119 = vmatprep.subr.bf16.mxu1 %v1118_v24 }
 0x19e   :  { %p1164_p3 = por %p1163_p2, %p1162_p1 }
 0x19f   :  { %1089 = vmatpush3.bf16.msra.mxu0 %v1088_v30 }
 0x1a0   :  { %1121 = vmatpush3.bf16.msra.mxu1 %v1120_v31  ;;  %1091 = vmatprep.subr.bf16.mxu0 %v1090_v32  ;;  %p1165_p4 = pnand %p1164_p3, %p1158_p0 }
 0x1a1   :  { %1123 = vmatprep.subr.bf16.mxu1 %v1122_v36 }
 0x1a3   :  { %1093 = vmatpush3.bf16.msra.mxu0 %v1092_v41 }
 0x1a4   :  { %1125 = vmatpush3.bf16.msra.mxu1 %v1124_v60  ;;  %1095 = vmatprep.subr.bf16.mxu0 %v1094_v42 }
 0x1a5   :  { %1127 = vmatprep.subr.bf16.mxu1 %v1126_v46 }
 0x1a7   :  { %1097 = vmatpush3.bf16.msra.mxu0 %v1096_v52 }
 0x1a8   :  { %1129 = vmatpush3.bf16.msra.mxu1 %v1128_v54  ;;  %1099 = vmatprep.subr.bf16.mxu0 %v1098_v55 }
 0x1a9   :  { %1131 = vmatprep.subr.bf16.mxu1 %v1130_v0 }
 0x1ab   :  { %1101 = vmatpush3.bf16.msra.mxu0 %v1100_v5 }
 0x1ac   :  { %1133 = vmatpush3.bf16.msra.mxu1 %v1132_v6  ;;  %1103 = vmatprep.subr.bf16.mxu0 %v1102_v7 }
 0x1ad   :  { %1135 = vmatprep.subr.bf16.mxu1 %v1134_v10 }
 0x1af   :  { %1105 = vmatpush3.bf16.msra.mxu0 %v1104_v13 }
 0x1b0   :  { %1137 = vmatpush3.bf16.msra.mxu1 %v1136_v14 }
 0x1b2   :  { %718 = vmatmul.mubr.f32.vlgmr.msra.gmra.mrb[4].mxu0 %v367_v53 }
 0x1b3   :  { %788 = vmatmul.mubr.f32.vlgmr.msra.gmra.mrb[4].mxu1 %v369_v58 }
 0x265   :  { %v890_v16 = vpop.f32.mrb[2].mxu0 }
 0x266   :  { %v925_v17 = vpop.f32.mrb[2].mxu1  ;;  %v891_v19 = vpop.f32.mrb[3].mxu0 }
 0x267   :  { %v892_v20 = vadd.f32 %v891_v19, %v890_v16  ;;  %v926_v21 = vpop.f32.mrb[3].mxu1 }
 0x268   :  { %v927_v22 = vadd.f32 %v926_v21, %v925_v17 }
 0x269   :  { %v509_v23 = vadd.f32 %v892_v20, %v856_v18 }
 0x26b   :  { %v579_v24 = vadd.f32 %v927_v22, %v509_v23 }
 0x26d   :  { %806 = vst.msk [vmem:[#allocation4] sm:$0xff] %vm804_vm5, %v579_v24 }
 0x26e   :  { %1168 = shalt.err (!%p1165_p4)
}
 0x26f   :  { %s1169_s22 = scalar_lea.hbm %s1813_s11, 128 }
 0x270   :  { %p1170_p5 = scmp.ne.s32.totalorder %s1813_s11, %s1169_s22  ;;  %p1173_p6 = scmp.lt.u32.totalorder %s1169_s22, %s1813_s11 }
 0x272   :  { %p1175_p7 = pnand %p1173_p6, %p1170_p5 }
 0x274   :  { %1178 = shalt.err (!%p1175_p7)
}
 0x275   :  { %827 = dma.vmem_to_hbm [thread:$0]  %s825_s20, 128, %s1813_s11, [#allocation5]   ;;  %v857_v53 = vld [vmem:[%s1810_s8] ss:$0 sm:$0xff] }
 0x276   :  { %s1231_s0 = smov [#allocation6]   ;;  %v801_v36 = vld [vmem:[%s1811_s9] sm:$0xff]  ;;  %s1232_s8 = smov [#allocation2]  }
 0x277   :  { %s834_s11 = sshll.u32 %s1231_s0, 4  ;;  %s814_s5 = sshll.u32 %s1232_s8, 4  ;;  %s835_s11 = int_to_ptr.vmem [resolvable:$true] %s834_s11  ;;  %s815_s5 = int_to_ptr.vmem [resolvable:$true] %s814_s5 }
 0x278   :  { %s1179_s15 = scalar_lea.vmem %s835_s11, 128  ;;  %p1184_p9 = scmp.lt.s32.totalorder %s835_s11, %s835_s11 }
 0x279   :  { %p1180_p8 = scmp.ne.s32.totalorder %s835_s11, %s1179_s15  ;;  %p1185_p10 = scmp.lt.s32.totalorder %s1179_s15, %s1179_s15 }
 0x27b   :  { %p1186_p11 = por %p1185_p10, %p1184_p9 }
 0x27d   :  { %p1187_p12 = pnand %p1186_p11, %p1180_p8 }
 0x285   :  { %v960_v44 = vpop.f32.mrb[4].mxu0 }
 0x286   :  { %v995_v59 = vpop.f32.mrb[4].mxu1  ;;  %v961_v58 = vpop.f32.mrb[5].mxu0 }
 0x287   :  { %v962_v25 = vadd.f32 %v961_v58, %v960_v44  ;;  %v996_v26 = vpop.f32.mrb[5].mxu1 }
 0x288   :  { %v997_v27 = vadd.f32 %v996_v26, %v995_v59 }
 0x289   :  { %v720_v28 = vadd.f32 %v962_v25, %v857_v53 }
 0x28b   :  { %v790_v29 = vadd.f32 %v997_v27, %v720_v28 }
 0x28d   :  { %v793_v30 = vmin.f32 %v790_v29, 20.0  ;;  %vm794_vm6 = vcmp.gt.f32.partialorder %v790_v29, 20.0 }
 0x28f   :  { %v795_v31 = vmul.f32 1.442695, %v793_v30 }
 0x291   :  { %1153 = vpow2.f32 %v795_v31 }
 0x29b   :  { %v1154_v32 = vpop.eup %1153 }
 0x29c   :  { %v797_v33 = vadd.f32 1.0, %v1154_v32 }
 0x29e   :  { %1155 = vlog2.f32 %v797_v33 }
 0x2a8   :  { %v1156_v34 = vpop.eup %1155 }
 0x2a9   :  { %v799_v35 = vmul.f32 0.6931472, %v1156_v34 }
 0x2ab   :  { %v800_v37 = vsel %vm794_vm6, %v790_v29, %v799_v35 }
 0x2ac   :  { %v802_v38 = vmul.f32 %v801_v36, %v800_v37  ;;  %807 = vst.msk [vmem:[#allocation6] sm:$0xff] %vm804_vm5, %v800_v37 }
 0x2ad   :  { %1190 = shalt.err (!%p1187_p12)
}
 0x2ae   :  { %s1191_s17 = scalar_lea.hbm %s1814_s12, 128 }
 0x2af   :  { %p1192_p13 = scmp.ne.s32.totalorder %s1814_s12, %s1191_s17  ;;  %p1195_p0 = scmp.lt.u32.totalorder %s1191_s17, %s1814_s12 }
 0x2b1   :  { %p1197_p1 = pnand %p1195_p0, %p1192_p13 }
 0x2b3   :  { %1200 = shalt.err (!%p1197_p1)
}
 0x2b4   :  { %837 = dma.vmem_to_hbm [thread:$0]  %s835_s11, 128, %s1814_s12, [#allocation5]   ;;  %v803_v39 = vadd.f32 %v802_v38, %v579_v24 }
 0x2b5   :  { %s1201_s20 = scalar_lea.vmem %s815_s5, 128  ;;  %p1206_p3 = scmp.lt.s32.totalorder %s815_s5, %s815_s5 }
 0x2b6   :  { %805 = vst.msk [vmem:[#allocation2] sm:$0xff] %vm804_vm5, %v803_v39  ;;  %p1202_p2 = scmp.ne.s32.totalorder %s815_s5, %s1201_s20  ;;  %p1207_p4 = scmp.lt.s32.totalorder %s1201_s20, %s1201_s20 }
 0x2b8   :  { %p1208_p5 = por %p1207_p4, %p1206_p3 }
 0x2ba   :  { %p1209_p6 = pnand %p1208_p5, %p1202_p2 }
 0x2bc   :  { %1212 = shalt.err (!%p1209_p6)
}
 0x2bd   :  { %s1213_s1 = scalar_lea.hbm %s1812_s10, 128 }
 0x2be   :  { %p1214_p7 = scmp.ne.s32.totalorder %s1812_s10, %s1213_s1  ;;  %p1217_p8 = scmp.lt.u32.totalorder %s1213_s1, %s1812_s10 }
 0x2c0   :  { %p1219_p9 = pnand %p1217_p8, %p1214_p7 }
 0x2c2   :  { %1222 = shalt.err (!%p1219_p9)
}
 0x2c3   :  { %817 = dma.vmem_to_hbm [thread:$0]  %s815_s5, 128, %s1812_s10, [#allocation3]  }
 0x2c4   :  { %1223 = dma.done.wait [#allocation3], 128  }
 0x2c5   :  { %1224 = vsyncadd [#allocation3], 4294967168 }
 0x2c6   :  { %1225 = dma.done.wait [#allocation5], 256  }
 0x2c7   :  { %1226 = vsyncadd [#allocation5], 4294967040 }
 0x2c8   :  { %847 = vsyncpa [#allocation3], 1 }
 0x2c9   :  { %848 = vsyncpa [#allocation5], 1 }

</bundles_post_ra>
